<compile_context>
chip_gen: v7x
topology: tpu7x:2x2x1
jax: 0.10.0
libtpu: 0.0.40
codegen_flags: <defaults>
</compile_context>

<pallas_src>
import functools

import jax
import jax.numpy as jnp
from jax.experimental import pallas as pl
from jax.experimental.pallas import tpu as pltpu

_LANE = 128                     # lane width (last-dim alignment)


def _round_up(n, m):
    return ((n + m - 1) // m) * m


def _sublane(dtype):
    # bf16 packs 16 rows per vreg, f32 packs 8.
    return 16 if jnp.dtype(dtype) == jnp.dtype(jnp.bfloat16) else 8


# ---------------------------------------------------------------------------
# Fused kernel: h = x; for each layer: h = relu?(h @ W_i + b_i); store h.
# One grid step handles one batch tile; weights/biases are whole-array blocks
# with constant index maps (VMEM-resident across the grid).
# ---------------------------------------------------------------------------
def _fused_mlp_kernel(x_ref, *refs, n_layers):
    o_ref = refs[-1]
    wb_refs = refs[:-1]

    h = x_ref[...]                                  # already in the matmul dtype
    for i in range(n_layers):                       # Python-unrolled layer loop
        w = wb_refs[2 * i][...]
        b = wb_refs[2 * i + 1][...]
        # MXU matmul with f32 accumulation.
        acc = jnp.dot(h, w, preferred_element_type=jnp.float32)
        # Bias add + ReLU epilogue in f32 on the VPU (v5e has no bf16 VALU).
        acc = acc + b.astype(jnp.float32)
        if i != n_layers - 1:
            h = jnp.maximum(acc, 0.0).astype(w.dtype)   # back to matmul dtype
        else:
            h = acc
    o_ref[...] = h.astype(o_ref.dtype)              # lane-dense (padded) store


# ---------------------------------------------------------------------------
# Parameter init (PyTorch nn.Linear default init, stored as (in, out) so that
# y = x @ W + b) and zero-padding to TPU-friendly shapes.
# ---------------------------------------------------------------------------
def init_network_params(key, state_size, action_space_size, num_hidden, widths):
    assert len(widths) == num_hidden + 1, "DQN widths and number of layers mismatch!"
    dims = [state_size] + list(widths) + [action_space_size]
    params = []
    for i in range(len(dims) - 1):
        fan_in, fan_out = dims[i], dims[i + 1]
        key, wk, bk = jax.random.split(key, 3)
        bound = 1.0 / jnp.sqrt(jnp.float32(fan_in))
        w = jax.random.uniform(wk, (fan_in, fan_out), jnp.float32, -bound, bound)
        b = jax.random.uniform(bk, (1, fan_out), jnp.float32, -bound, bound)
        params.append((w, b))
    return params


def prepare_padded_params(params, param_dtype=jnp.bfloat16):
    """Zero-pad every W to (round128(in), round128(out)), b to (1, round128(out)).

    Zero padding keeps the math exact: padded input columns are zero and padded
    output columns / bias entries stay zero through every ReLU.
    """
    padded = []
    for w, b in params:
        fan_in, fan_out = w.shape
        in_p = _round_up(fan_in, _LANE)
        out_p = _round_up(fan_out, _LANE)
        w_p = jnp.zeros((in_p, out_p), param_dtype).at[:fan_in, :fan_out].set(
            w.astype(param_dtype))
        b_p = jnp.zeros((1, out_p), param_dtype).at[:, :fan_out].set(
            b.astype(param_dtype))
        padded.append((w_p, b_p))
    return padded


# ---------------------------------------------------------------------------
# Forward pass: pad x, run the single fused pallas_call (batch-tiled grid),
# slice the result back to (batch, action_space_size).
# ---------------------------------------------------------------------------
def network_forward(padded_params, x, action_space_size, *, out_dtype=jnp.float32):
    batch, state_size = x.shape
    n_layers = len(padded_params)
    act_dtype = padded_params[0][0].dtype
    in_p = padded_params[0][0].shape[0]
    out_p = padded_params[-1][0].shape[1]

    # Batch tiling: fill the MXU M dimension (128) once there is enough work;
    # below that, one tile padded to the sublane packing of the activation dtype.
    sub = _sublane(act_dtype)
    if batch >= _LANE:
        tile_m = _LANE
        batch_p = _round_up(batch, tile_m)
    else:
        tile_m = _round_up(max(batch, sub), sub)
        batch_p = tile_m
    n_tiles = batch_p // tile_m

    # Zero-pad activations once (cheap) and pre-cast to the matmul dtype so the
    # kernel never does a layer-0 dtype round trip.
    x_p = jnp.zeros((batch_p, in_p), act_dtype).at[:batch, :state_size].set(
        x.astype(act_dtype))

    flat_params = []
    in_specs = [pl.BlockSpec((tile_m, in_p), lambda i: (i, 0))]
    for w_p, b_p in padded_params:
        flat_params.extend([w_p, b_p])
        in_specs.append(pl.BlockSpec(w_p.shape, lambda i: (0, 0)))   # VMEM-resident
        in_specs.append(pl.BlockSpec(b_p.shape, lambda i: (0, 0)))

    # --- VMEM budget guard (v7x has 64 MiB physical / 32 MiB default scoped) ---
    param_bytes = sum(int(w.size) * w.dtype.itemsize + int(b.size) * b.dtype.itemsize
                      for w, b in padded_params)
    act_bytes = (tile_m * in_p * jnp.dtype(act_dtype).itemsize
                 + tile_m * out_p * jnp.dtype(out_dtype).itemsize)
    widest = max(w.shape[1] for w, _ in padded_params)
    interm_bytes = tile_m * widest * 4                    # f32 accumulator tiles
    est = 2 * (param_bytes + act_bytes) + 2 * interm_bytes  # 2x: double-buffering
    if est > 48 * 1024 * 1024:
        # TODO(synk): for very wide layers, tile the hidden dim with a reduction
        # grid axis ("arbitrary") + a VMEM f32 accumulator scratch instead.
        raise ValueError(
            f"Padded params/activations (~{est >> 20} MiB) exceed the all-resident "
            "VMEM budget; tile the hidden dimension.")
    vmem_limit = min(64 * 1024 * 1024, max(4 * est, 16 * 1024 * 1024))

    kernel = functools.partial(_fused_mlp_kernel, n_layers=n_layers)
    out_padded = pl.pallas_call(
        kernel,
        out_shape=jax.ShapeDtypeStruct((batch_p, out_p), out_dtype),
        grid=(n_tiles,),
        in_specs=in_specs,
        out_specs=pl.BlockSpec((tile_m, out_p), lambda i: (i, 0)),
        compiler_params=pltpu.CompilerParams(
            dimension_semantics=("parallel",),        # v7x: batch tiles across TCs
            vmem_limit_bytes=vmem_limit),
    )(x_p, *flat_params)

    return out_padded[:batch, :action_space_size]


if __name__ == "__main__":
    # DQN-style MLP shapes; batch chosen so the MXU M dimension is filled and
    # the batch grid has >1 tile (exercises the parallel grid path).
    batch = 256
    state_size = 16
    action_space_size = 8
    num_hidden = 2
    widths = [32, 64, 32]

    key = jax.random.PRNGKey(0)
    key, xk = jax.random.split(key)
    x = jax.random.normal(xk, (batch, state_size), jnp.float32)

    params = init_network_params(key, state_size, action_space_size,
                                 num_hidden, widths)
    # bf16 params/activations per the perf review (f32 accumulation inside).
    padded_params = prepare_padded_params(params, param_dtype=jnp.bfloat16)

    out = network_forward(padded_params, x, action_space_size)
    out = jax.block_until_ready(out)

    # Reference: same math with the same bf16 rounding of inputs/weights and
    # f32 accumulation, so only accumulation-order differences remain.
    h = x.astype(jnp.bfloat16)
    for i, (w, b) in enumerate(params):
        acc = jnp.dot(h, w.astype(jnp.bfloat16),
                      preferred_element_type=jnp.float32) + b.astype(jnp.float32)
        if i != len(params) - 1:
            h = jnp.maximum(acc, 0.0).astype(jnp.bfloat16)
        else:
            h = acc
    ref = h

    assert out.shape == (batch, action_space_size)
    assert jnp.allclose(out, ref, atol=2e-2, rtol=2e-2), (
        f"max abs err {jnp.max(jnp.abs(out - ref))}")

    print("KERNEL_OK")
</pallas_src>

<mosaic_0001>
module attributes {stable_mosaic.version = 11 : i64} {
  func.func @_fused_mlp_kernel(%arg0: i32, %arg1: memref<128x128xbf16, #tpu.memory_space<vmem>>, %arg2: memref<128x128xbf16, #tpu.memory_space<vmem>>, %arg3: memref<1x128xbf16, #tpu.memory_space<vmem>>, %arg4: memref<128x128xbf16, #tpu.memory_space<vmem>>, %arg5: memref<1x128xbf16, #tpu.memory_space<vmem>>, %arg6: memref<128x128xbf16, #tpu.memory_space<vmem>>, %arg7: memref<1x128xbf16, #tpu.memory_space<vmem>>, %arg8: memref<128x128xbf16, #tpu.memory_space<vmem>>, %arg9: memref<1x128xbf16, #tpu.memory_space<vmem>>, %arg10: memref<128x128xf32, #tpu.memory_space<vmem>>) attributes {dimension_semantics = [#tpu.dimension_semantics<parallel>], iteration_bounds = array<i64: 2>, scalar_prefetch = 0 : i64, scratch_operands = 0 : i64, tpu.core_type = #tpu.core_type<tc>, window_params = [{transform_indices = @transform_0, window_bounds = array<i64: 128, 128>}, {pipeline_mode = #tpu.pipeline_mode<synchronous>, transform_indices = @transform_1, window_bounds = array<i64: 128, 128>}, {pipeline_mode = #tpu.pipeline_mode<synchronous>, transform_indices = @transform_2, window_bounds = array<i64: 1, 128>}, {pipeline_mode = #tpu.pipeline_mode<synchronous>, transform_indices = @transform_3, window_bounds = array<i64: 128, 128>}, {pipeline_mode = #tpu.pipeline_mode<synchronous>, transform_indices = @transform_4, window_bounds = array<i64: 1, 128>}, {pipeline_mode = #tpu.pipeline_mode<synchronous>, transform_indices = @transform_5, window_bounds = array<i64: 128, 128>}, {pipeline_mode = #tpu.pipeline_mode<synchronous>, transform_indices = @transform_6, window_bounds = array<i64: 1, 128>}, {pipeline_mode = #tpu.pipeline_mode<synchronous>, transform_indices = @transform_7, window_bounds = array<i64: 128, 128>}, {pipeline_mode = #tpu.pipeline_mode<synchronous>, transform_indices = @transform_8, window_bounds = array<i64: 1, 128>}, {transform_indices = @transform_9, window_bounds = array<i64: 128, 128>}]} {
    %c0 = arith.constant 0 : index
    %c0_0 = arith.constant 0 : index
    %0 = vector.load %arg1[%c0, %c0_0] : memref<128x128xbf16, #tpu.memory_space<vmem>>, vector<128x128xbf16>
    %c0_1 = arith.constant 0 : index
    %c0_2 = arith.constant 0 : index
    %1 = vector.load %arg2[%c0_1, %c0_2] : memref<128x128xbf16, #tpu.memory_space<vmem>>, vector<128x128xbf16>
    %c0_3 = arith.constant 0 : index
    %c0_4 = arith.constant 0 : index
    %2 = vector.load %arg3[%c0_3, %c0_4] : memref<1x128xbf16, #tpu.memory_space<vmem>>, vector<1x128xbf16>
    %cst = arith.constant dense<0.000000e+00> : vector<128x128xf32>
    %3 = tpu.matmul %0, %1, %cst {dimension_numbers = #tpu.dot_dimension_numbers<[1], [0], [0], [1], [0, 0, 1, 1], [], []>} : vector<128x128xbf16>, vector<128x128xbf16>, vector<128x128xf32> -> vector<128x128xf32>
    %4 = arith.extf %2 : vector<1x128xbf16> to vector<1x128xf32>
    %5 = vector.broadcast %4 : vector<1x128xf32> to vector<128x128xf32>
    %6 = arith.addf %3, %5 : vector<128x128xf32>
    %cst_5 = arith.constant 0.000000e+00 : f32
    %7 = vector.broadcast %cst_5 : f32 to vector<128x128xf32>
    %8 = arith.maximumf %6, %7 : vector<128x128xf32>
    %9 = arith.truncf %8 : vector<128x128xf32> to vector<128x128xbf16>
    %c0_6 = arith.constant 0 : index
    %c0_7 = arith.constant 0 : index
    %10 = vector.load %arg4[%c0_6, %c0_7] : memref<128x128xbf16, #tpu.memory_space<vmem>>, vector<128x128xbf16>
    %c0_8 = arith.constant 0 : index
    %c0_9 = arith.constant 0 : index
    %11 = vector.load %arg5[%c0_8, %c0_9] : memref<1x128xbf16, #tpu.memory_space<vmem>>, vector<1x128xbf16>
    %cst_10 = arith.constant dense<0.000000e+00> : vector<128x128xf32>
    %12 = tpu.matmul %9, %10, %cst_10 {dimension_numbers = #tpu.dot_dimension_numbers<[1], [0], [0], [1], [0, 0, 1, 1], [], []>} : vector<128x128xbf16>, vector<128x128xbf16>, vector<128x128xf32> -> vector<128x128xf32>
    %13 = arith.extf %11 : vector<1x128xbf16> to vector<1x128xf32>
    %14 = vector.broadcast %13 : vector<1x128xf32> to vector<128x128xf32>
    %15 = arith.addf %12, %14 : vector<128x128xf32>
    %cst_11 = arith.constant 0.000000e+00 : f32
    %16 = vector.broadcast %cst_11 : f32 to vector<128x128xf32>
    %17 = arith.maximumf %15, %16 : vector<128x128xf32>
    %18 = arith.truncf %17 : vector<128x128xf32> to vector<128x128xbf16>
    %c0_12 = arith.constant 0 : index
    %c0_13 = arith.constant 0 : index
    %19 = vector.load %arg6[%c0_12, %c0_13] : memref<128x128xbf16, #tpu.memory_space<vmem>>, vector<128x128xbf16>
    %c0_14 = arith.constant 0 : index
    %c0_15 = arith.constant 0 : index
    %20 = vector.load %arg7[%c0_14, %c0_15] : memref<1x128xbf16, #tpu.memory_space<vmem>>, vector<1x128xbf16>
    %cst_16 = arith.constant dense<0.000000e+00> : vector<128x128xf32>
    %21 = tpu.matmul %18, %19, %cst_16 {dimension_numbers = #tpu.dot_dimension_numbers<[1], [0], [0], [1], [0, 0, 1, 1], [], []>} : vector<128x128xbf16>, vector<128x128xbf16>, vector<128x128xf32> -> vector<128x128xf32>
    %22 = arith.extf %20 : vector<1x128xbf16> to vector<1x128xf32>
    %23 = vector.broadcast %22 : vector<1x128xf32> to vector<128x128xf32>
    %24 = arith.addf %21, %23 : vector<128x128xf32>
    %cst_17 = arith.constant 0.000000e+00 : f32
    %25 = vector.broadcast %cst_17 : f32 to vector<128x128xf32>
    %26 = arith.maximumf %24, %25 : vector<128x128xf32>
    %27 = arith.truncf %26 : vector<128x128xf32> to vector<128x128xbf16>
    %c0_18 = arith.constant 0 : index
    %c0_19 = arith.constant 0 : index
    %28 = vector.load %arg8[%c0_18, %c0_19] : memref<128x128xbf16, #tpu.memory_space<vmem>>, vector<128x128xbf16>
    %c0_20 = arith.constant 0 : index
    %c0_21 = arith.constant 0 : index
    %29 = vector.load %arg9[%c0_20, %c0_21] : memref<1x128xbf16, #tpu.memory_space<vmem>>, vector<1x128xbf16>
    %cst_22 = arith.constant dense<0.000000e+00> : vector<128x128xf32>
    %30 = tpu.matmul %27, %28, %cst_22 {dimension_numbers = #tpu.dot_dimension_numbers<[1], [0], [0], [1], [0, 0, 1, 1], [], []>} : vector<128x128xbf16>, vector<128x128xbf16>, vector<128x128xf32> -> vector<128x128xf32>
    %31 = arith.extf %29 : vector<1x128xbf16> to vector<1x128xf32>
    %32 = vector.broadcast %31 : vector<1x128xf32> to vector<128x128xf32>
    %33 = arith.addf %30, %32 : vector<128x128xf32>
    %c0_23 = arith.constant 0 : index
    %c0_24 = arith.constant 0 : index
    %34 = vector.load %arg10[%c0_23, %c0_24] : memref<128x128xf32, #tpu.memory_space<vmem>>, vector<128x128xf32>
    tpu.vector_store %arg10[%c0_23, %c0_24], %33 {strides = array<i32>} : memref<128x128xf32, #tpu.memory_space<vmem>>, vector<128x128xf32>,
    return
  }
  func.func @transform_0(%arg0: i32) -> (i32, i32) {
    %c0_i32 = arith.constant 0 : i32
    %c0_i32_0 = arith.constant 0 : i32
    return %arg0, %c0_i32 : i32, i32
  }
  func.func @transform_1(%arg0: i32) -> (i32, i32) {
    %c0_i32 = arith.constant 0 : i32
    %c0_i32_0 = arith.constant 0 : i32
    %c0_i32_1 = arith.constant 0 : i32
    return %c0_i32, %c0_i32_0 : i32, i32
  }
  func.func @transform_2(%arg0: i32) -> (i32, i32) {
    %c0_i32 = arith.constant 0 : i32
    %c0_i32_0 = arith.constant 0 : i32
    %c0_i32_1 = arith.constant 0 : i32
    return %c0_i32, %c0_i32_0 : i32, i32
  }
  func.func @transform_3(%arg0: i32) -> (i32, i32) {
    %c0_i32 = arith.constant 0 : i32
    %c0_i32_0 = arith.constant 0 : i32
    %c0_i32_1 = arith.constant 0 : i32
    return %c0_i32, %c0_i32_0 : i32, i32
  }
  func.func @transform_4(%arg0: i32) -> (i32, i32) {
    %c0_i32 = arith.constant 0 : i32
    %c0_i32_0 = arith.constant 0 : i32
    %c0_i32_1 = arith.constant 0 : i32
    return %c0_i32, %c0_i32_0 : i32, i32
  }
  func.func @transform_5(%arg0: i32) -> (i32, i32) {
    %c0_i32 = arith.constant 0 : i32
    %c0_i32_0 = arith.constant 0 : i32
    %c0_i32_1 = arith.constant 0 : i32
    return %c0_i32, %c0_i32_0 : i32, i32
  }
  func.func @transform_6(%arg0: i32) -> (i32, i32) {
    %c0_i32 = arith.constant 0 : i32
    %c0_i32_0 = arith.constant 0 : i32
    %c0_i32_1 = arith.constant 0 : i32
    return %c0_i32, %c0_i32_0 : i32, i32
  }
  func.func @transform_7(%arg0: i32) -> (i32, i32) {
    %c0_i32 = arith.constant 0 : i32
    %c0_i32_0 = arith.constant 0 : i32
    %c0_i32_1 = arith.constant 0 : i32
    return %c0_i32, %c0_i32_0 : i32, i32
  }
  func.func @transform_8(%arg0: i32) -> (i32, i32) {
    %c0_i32 = arith.constant 0 : i32
    %c0_i32_0 = arith.constant 0 : i32
    %c0_i32_1 = arith.constant 0 : i32
    return %c0_i32, %c0_i32_0 : i32, i32
  }
  func.func @transform_9(%arg0: i32) -> (i32, i32) {
    %c0_i32 = arith.constant 0 : i32
    %c0_i32_0 = arith.constant 0 : i32
    return %arg0, %c0_i32 : i32, i32
  }
}

</mosaic_0001>

<bundles_post_ra>
// kernel: tpu_custom_call.1
= control target key start
LH: loop header
LB: loop body
LE: loop exit
PB: predicated region body
PF: predicated region fallthrough
CT: control target
= control target key end

     0   :  { %s2362_s0 = inlined_call_operand.hbm [shape: bf16[256,128], index: 0, kind: input, shape index: {}]   ;;  %s2363_s1 = inlined_call_operand.hbm [shape: bf16[128,128], index: 1, kind: input, shape index: {}]   ;;  %s2364_s2 = inlined_call_operand.vmem [shape: bf16[1,128], index: 2, kind: input, shape index: {}]   ;;  %s2365_s3 = inlined_call_operand.hbm [shape: bf16[128,128], index: 3, kind: input, shape index: {}]   ;;  %s2366_s4 = inlined_call_operand.vmem [shape: bf16[1,128], index: 4, kind: input, shape index: {}]   ;;  %s2367_s5 = inlined_call_operand.hbm [shape: bf16[128,128], index: 5, kind: input, shape index: {}]   ;;  %s2368_s6 = inlined_call_operand.vmem [shape: bf16[1,128], index: 6, kind: input, shape index: {}]   ;;  %s2369_s7 = inlined_call_operand.hbm [shape: bf16[128,128], index: 7, kind: input, shape index: {}]   ;;  %s2370_s8 = inlined_call_operand.vmem [shape: bf16[1,128], index: 8, kind: input, shape index: {}]   ;;  %s2371_s9 = inlined_call_operand.hbm [shape: f32[256,128], index: 9, kind: output, shape index: {}]  }
   0x1   :  { %2378 = sst [smem:[#allocation18_spill]] %s2371_s9 }
   0x2   :  { %14 = vsyncpa [#allocation3], 0 }
   0x3   :  { %16 = vsyncpa [#allocation3 + $0x1], 0 }
   0x4   :  { %17 = vsyncpa [#allocation6], 0 }
   0x5   :  { %18 = vsyncpa [#allocation9], 0 }
   0x6   :  { %19 = vsyncpa [#allocation4], 0 }
   0x7   :  { %21 = vsyncpa [#allocation4 + $0x1], 0  ;;  %s2022_s30 = smov 0   ;;  %s2024_s10 = smov 0  }
   0x8   :  { %s2026_s11 = smov 0   ;;  %s2028_s12 = smov 0  }
   0x9 LB: > { %2379 = sst [smem:[#allocation16_spill]] %s1948_s30  ;;  %s2043_s13 = sadd.s32 4294967295, %s1960_s12   ;;  %s1960_s12 = sphi %s2028_s12, %s2403_s12   ;;  %s1956_s11 = sphi %s2026_s11, %s2402_s11   ;;  %s1952_s10 = sphi %s2024_s10, %s2401_s10   ;;  %s1948_s30 = sphi %s2022_s30, %s2400_s30  }
   0xa   : > { %s1357_s14 = sadd.s32 4294967294, %s1960_s12   ;;  %p47_p0 = scmp.ne.s32.totalorder %s1952_s10, %s1948_s30 }
   0xb   : > { %p2372_p1 = scmp.eq.s32.totalorder %s2043_s13, 0  ;;  %p245_p3 = scmp.eq.s32.totalorder %s1357_s14, 1 }
   0xc   : > { %p1358_p5 = scmp.ge.s32.totalorder %s1960_s12, 1  ;;  %p252_p7 = scmp.lt.s32.totalorder %s1960_s12, 3 }
   0xd   : > { %p2052_p4 = por %p2372_p1, %p47_p0  ;;  %p2057_p6 = por %p245_p3, %p47_p0 }
   0xe   : > { %p2062_p8 = pnand %p1358_p5, %p252_p7  ;;  %s1962_s18 = smov [#allocation5]  }
   0xf   : > { %s2380_s15 = scalar_select %p2052_p4, 1, 0 }
  0x10   : > { %s2381_s16 = scalar_select %p2057_p6, 1, 0 }
  0x11   : > { %s2383_s17 = scalar_select %p2062_p8, 1, 0 }
  0x12   : > { %2382 = sst [smem:[#allocation17_spill]] %s2381_s16  ;;  %s264_s19 = sshll.u32 %s1962_s18, 4  ;;  %s2066_s19 = int_to_ptr.vmem [resolvable:$true] %s264_s19 }
  0x13   : > { %p1633_p9 = pneg %p2062_p8  ;;  %s1963_s21 = smov [#allocation8]  }
  0x14   : > { %s296_s22 = sshll.u32 %s1963_s21, 4  ;;  %s1964_s23 = smov [#allocation7]   ;;  %s2077_s22 = int_to_ptr.vmem [resolvable:$true] %s296_s22 }
  0x15   : > { %p2073_p11 = pnand %p1633_p9, %p2372_p1  ;;  %s2079_s24 = sshll.u32 %s1964_s23, 4  ;;  %s281_s24 = int_to_ptr.vmem [resolvable:$true] %s2079_s24 }
  0x16   : > { %s1744_s27 = scalar_lea.hbm %s2363_s1, 1024 }
  0x17   : > { %p1745_p12 = scmp.ne.s32.totalorder %s2363_s1, %s1744_s27  ;;  %p2089_p13 = pneg %p2073_p11 }
  0x18   : > { %p1751_p5 = scmp.lt.u32.totalorder %s1744_s27, %s2363_s1 }
  0x19   : > { %p1747_p0 = pnand %p2089_p13, %p1745_p12 }
  0x1b   : > { %p1748_p3 = pneg %p1747_p0 }
  0x1d   : > { %p1753_p7 = pnand %p1751_p5, %p1748_p3 }
  0x1f   : > { %1756 = shalt.err (!%p1753_p7)
}
  0x20   : > { %s1757_s23 = scalar_lea.vmem %s2066_s19, 1024  ;;  %p1765_p2 = scmp.lt.s32.totalorder %s2066_s19, %s2066_s19 }
  0x21   : > { %p1758_p9 = scmp.ne.s32.totalorder %s2066_s19, %s1757_s23  ;;  %p1766_p6 = scmp.lt.s32.totalorder %s1757_s23, %s1757_s23 }
  0x23   : > { %p1760_p10 = pnand %p1758_p9, %p2089_p13  ;;  %p1767_p12 = por %p1766_p6, %p1765_p2 }
  0x25   : > { %p1761_p1 = pneg %p1760_p10 }
  0x27   : > { %p1768_p0 = pnand %p1767_p12, %p1761_p1 }
  0x29   : > { %1771 = shalt.err (!%p1768_p0)
}
  0x2a   : > { %s1965_s25 = smov 64   ;;  %s1966_s26 = smov 4  }
  0x2b   : > { %1636 = dma.hbm_to_vmem [thread:$0]  (!%p2073_p11), %s2363_s1, 1024, %s2066_s19, [#allocation6], %s1965_s25, %s1965_s25, %s1966_s26  }
  0x2c   : > { %s1772_s21 = scalar_lea.hbm %s2367_s5, 1024 }
  0x2d   : > { %p1773_p1 = scmp.ne.s32.totalorder %s2367_s5, %s1772_s21  ;;  %p1779_p10 = scmp.lt.u32.totalorder %s1772_s21, %s2367_s5 }
  0x2f   : > { %p1775_p2 = pnand %p1773_p1, %p2089_p13 }
  0x31   : > { %p1776_p6 = pneg %p1775_p2 }
  0x33   : > { %p1781_p3 = pnand %p1779_p10, %p1776_p6 }
  0x35   : > { %1784 = shalt.err (!%p1781_p3)
}
  0x36   : > { %s1785_s19 = scalar_lea.vmem %s2077_s22, 1024  ;;  %p1793_p12 = scmp.lt.s32.totalorder %s2077_s22, %s2077_s22 }
  0x37   : > { %p1786_p5 = scmp.ne.s32.totalorder %s2077_s22, %s1785_s19  ;;  %p1794_p0 = scmp.lt.s32.totalorder %s1785_s19, %s1785_s19 }
  0x39   : > { %p1788_p7 = pnand %p1786_p5, %p2089_p13  ;;  %p1795_p1 = por %p1794_p0, %p1793_p12 }
  0x3b   : > { %p1789_p9 = pneg %p1788_p7 }
  0x3d   : > { %p1796_p2 = pnand %p1795_p1, %p1789_p9 }
  0x3f   : > { %1799 = shalt.err (!%p1796_p2)
}
  0x40   : > { %1642 = dma.hbm_to_vmem [thread:$0]  (!%p2073_p11), %s2367_s5, 1024, %s2077_s22, [#allocation9], %s1965_s25, %s1965_s25, %s1966_s26  }
  0x41   : > { %s1800_s28 = scalar_lea.hbm %s2365_s3, 1024 }
  0x42   : > { %p1801_p6 = scmp.ne.s32.totalorder %s2365_s3, %s1800_s28  ;;  %p1807_p5 = scmp.lt.u32.totalorder %s1800_s28, %s2365_s3 }
  0x44   : > { %p1803_p10 = pnand %p1801_p6, %p2089_p13 }
  0x46   : > { %p1804_p3 = pneg %p1803_p10 }
  0x48   : > { %p1809_p7 = pnand %p1807_p5, %p1804_p3 }
  0x4a   : > { %1812 = shalt.err (!%p1809_p7)
}
  0x4b   : > { %s1813_s19 = scalar_lea.vmem %s281_s24, 1024  ;;  %p1821_p1 = scmp.lt.s32.totalorder %s281_s24, %s281_s24 }
  0x4c   : > { %p1814_p9 = scmp.ne.s32.totalorder %s281_s24, %s1813_s19  ;;  %p1822_p2 = scmp.lt.s32.totalorder %s1813_s19, %s1813_s19 }
  0x4e   : > { %p1816_p12 = pnand %p1814_p9, %p2089_p13  ;;  %p1823_p4 = por %p1822_p2, %p1821_p1 }
  0x50   : > { %p1817_p0 = pneg %p1816_p12 }
  0x52   : > { %p1824_p8 = pnand %p1823_p4, %p1817_p0 }
  0x54   : > { %1827 = shalt.err (!%p1824_p8)
}
  0x55   : > { %1639 = dma.hbm_to_vmem [thread:$0]  (!%p2073_p11), %s2365_s3, 1024, %s281_s24, [#allocation6], %s1965_s25, %s1965_s25, %s1966_s26  }
  0x56   : > { %s1967_s30 = smov [#allocation10]   ;;  %s1828_s29 = scalar_lea.hbm %s2369_s7, 1024 }
  0x57   : > { %s312_s16 = sshll.u32 %s1967_s30, 4  ;;  %p1829_p4 = scmp.ne.s32.totalorder %s2369_s7, %s1828_s29  ;;  %s313_s16 = int_to_ptr.vmem [resolvable:$true] %s312_s16 }
  0x58   : > { %p1835_p10 = scmp.lt.u32.totalorder %s1828_s29, %s2369_s7 }
  0x59   : > { %p1831_p8 = pnand %p1829_p4, %p2089_p13 }
  0x5b   : > { %p1832_p6 = pneg %p1831_p8 }
  0x5d   : > { %p1837_p3 = pnand %p1835_p10, %p1832_p6 }
  0x5f   : > { %1840 = shalt.err (!%p1837_p3)
}
  0x60   : > { %s1841_s24 = scalar_lea.vmem %s313_s16, 1024  ;;  %p1849_p12 = scmp.lt.s32.totalorder %s313_s16, %s313_s16 }
  0x61   : > { %p1842_p5 = scmp.ne.s32.totalorder %s313_s16, %s1841_s24  ;;  %p1850_p0 = scmp.lt.s32.totalorder %s1841_s24, %s1841_s24 }
  0x63   : > { %p1844_p7 = pnand %p1842_p5, %p2089_p13  ;;  %p1851_p1 = por %p1850_p0, %p1849_p12 }
  0x65   : > { %p1845_p9 = pneg %p1844_p7 }
  0x67   : > { %p1852_p2 = pnand %p1851_p1, %p1845_p9 }
  0x69   : > { %1855 = shalt.err (!%p1852_p2)
}
  0x6a   : > { %1645 = dma.hbm_to_vmem [thread:$0]  (!%p2073_p11), %s2369_s7, 1024, %s313_s16, [#allocation9], %s1965_s25, %s1965_s25, %s1966_s26  }
  0x6b   : > { %s2183_s14 = sadd.s32 1, %s1960_s12   ;;  %s34_s20 = sadd.s32 1, %s1956_s11 }
  0x6c   : > { %s31_s30 = ssub.s32 %s1960_s12, %s2183_s14  ;;  %p41_p13 = scmp.ne.s32.totalorder %s1956_s11, %s1952_s10 }
  0x6d   : > { %p32_p4 = scmp.eq.s32.totalorder %s31_s30, 0  ;;  %p42_p8 = scmp.eq.s32.totalorder %s1960_s12, 0 }
  0x6e   : > { %p2386_p6 = scmp.eq.s32.totalorder %s2043_s13, 1  ;;  %p1658_p3 = scmp.lt.s32.totalorder %s1960_s12, 2 }
  0x6f   : > { %s2199_s28 = scalar_select %p32_p4, %s1956_s11, %s34_s20  }
  0x70   : > { %p2193_p10 = por %p2386_p6, %p41_p13  ;;  %p43_p5 = por %p42_p8, %p41_p13 }
  0x71   : > { %s329_s29 = sand.u32 1, %s1956_s11   ;;  %s1419_s16 = sshll.u32 %s1960_s12, 10 }
  0x72   : > { %s1364_s18 = sshll.u32 %s329_s29, 6  ;;  %s2206_s19 = scalar_lea.hbm %s2362_s0, %s1419_s16 }
  0x73   : > { %s333_s24 = scalar_lea.vmem [#allocation2], %s1364_s18  ;;  %p2210_p11 = pnand %p1658_p3, %p43_p5 }
  0x74   : > { %s340_s22 = sshll.u32 %s333_s24, 4  ;;  %s2214_s20 = scalar_lea.sflag [#allocation3], %s329_s29  ;;  %s2208_s22 = int_to_ptr.vmem [resolvable:$true] %s340_s22 }
  0x75   : > { %s1856_s30 = scalar_lea.hbm %s2206_s19, 1024  ;;  %p1858_p9 = pneg %p2210_p11 }
  0x76   : > { %p1857_p7 = scmp.ne.s32.totalorder %s2206_s19, %s1856_s30  ;;  %s1861_s21 = scalar_lea.hbm %s2362_s0, 2048 }
  0x77   : > { %p1862_p1 = scmp.lt.u32.totalorder %s2206_s19, %s2362_s0  ;;  %p1863_p2 = scmp.lt.u32.totalorder %s1861_s21, %s1856_s30 }
  0x78   : > { %p1859_p12 = pnand %p1858_p9, %p1857_p7  ;;  %p1865_p4 = scmp.lt.u32.totalorder %s1856_s30, %s2206_s19 }
  0x79   : > { %p1864_p13 = por %p1863_p2, %p1862_p1 }
  0x7a   : > { %p1860_p0 = pneg %p1859_p12 }
  0x7b   : > { %p1866_p8 = por %p1865_p4, %p1864_p13 }
  0x7d   : > { %p1867_p6 = pnand %p1866_p8, %p1860_p0 }
  0x7f   : > { %1870 = shalt.err (!%p1867_p6)
}
  0x80   : > { %s1871_s29 = scalar_lea.vmem %s2208_s22, 1024  ;;  %s1968_s18 = smov [#allocation2]  }
  0x81   : > { %p1872_p3 = scmp.ne.s32.totalorder %s2208_s22, %s1871_s29  ;;  %s1876_s16 = sshll.u32 %s1968_s18, 4  ;;  %s1877_s16 = int_to_ptr.vmem [resolvable:$false] %s1876_s16 }
  0x82   : > { %s1878_s23 = scalar_lea.vmem %s1877_s16, 2048  ;;  %p1879_p12 = scmp.lt.s32.totalorder %s2208_s22, %s1877_s16 }
  0x83   : > { %p1874_p5 = pnand %p1872_p3, %p1858_p9  ;;  %p1880_p1 = scmp.lt.s32.totalorder %s1878_s23, %s1871_s29 }
  0x85   : > { %p1875_p7 = pneg %p1874_p5  ;;  %p1881_p2 = por %p1880_p1, %p1879_p12 }
  0x87   : > { %p1882_p13 = pnand %p1881_p2, %p1875_p7 }
  0x89   : > { %1885 = shalt.err (!%p1882_p13)
}
  0x8a   : > { %1649 = dma.hbm_to_vmem [thread:$0]  (!%p2210_p11), %s2206_s19, 1024, %s2208_s22, %s2214_s20, %s1965_s25, %s1965_s25, %s1966_s26  }
  0x8b   : > { %p2389_p9 = scmp.ne.s32.totalorder %s2383_s17, 0 }
  0x8c   : > { %s2248_s30 = sand.u32 (!%p2389_p9), 1, %s1952_s10   ;;  %p2390_p0 = scmp.ne.s32.totalorder (!%p2389_p9), %s2380_s15, 0 }
  0x8d   : > { %352 = sbr.rel (%p2389_p9) target bundleno = 1111 (0x457), region = 56  ;;  %s1368_s21 = sshll.u32 (!%p2389_p9), %s2248_s30, 6 }
  0x8e   : > { %s355_s24 = scalar_lea.sflag (!%p2389_p9), [#allocation3], %s2248_s30  ;;  %s2252_s29 = scalar_lea.vmem (!%p2389_p9), [#allocation2], %s1368_s21 }
  0x94   : > { %1931 = dma.done.wait (%p2390_p0), %s355_s24, 1024  }
  0x95   : > { %1933 = vsyncadd (%p2390_p0), %s355_s24, 4294966272  ;;  %p2391_p11 = scmp.eq.s32.totalorder %s2043_s13, 0 }
  0x97   : > { %1935 = dma.done.wait (%p2391_p11), [#allocation6], 2048   ;;  %p2392_p4 = pmov %p2391_p11 }
  0x99   : > { %1937 = vsyncadd (%p2392_p4), [#allocation6], 4294965248  ;;  %p2393_p8 = pmov %p2392_p4 }
  0x9a   : > { %p2394_p6 = pmov %p2392_p4 }
  0x9b   : > { %1939 = dma.done.wait (%p2393_p8), [#allocation9], 2048  }
  0x9c   : > { %1941 = vsyncadd (%p2394_p6), [#allocation9], 4294965248  ;;  %v1704_v0 = vld [vmem:[#allocation5] sm:$0xff]   ;;  %v1705_v1 = vld [vmem:[#allocation5 + $0x8] sm:$0xff]   ;;  %v446_v30 = vlaneseq  ;;  %s1373_s18 = sshll.u32 %s2248_s30, 7  ;;  %s1420_s23 = sshll.u32 %s2043_s13, 11 }
  0x9d   : > { %1485 = vmatprep.subr.bf16.mxu0 %v1704_v0  ;;  %v1706_v2 = vld [vmem:[#allocation5 + $0x10] sm:$0xff]   ;;  %v1707_v3 = vld [vmem:[#allocation5 + $0x18] sm:$0xff]   ;;  %v1712_v4 = vld [vmem:[%s2252_s29] sm:$0xff]   ;;  %s2293_s16 = scalar_lea.vmem [#allocation11], %s1373_s18  ;;  %s2395_s15 = sld [smem:[#allocation18_spill]] }
  0x9e   : > { %1486 = vmatpush3.bf16.msra.mxu0 %v1704_v0  ;;  %1501 = vmatprep.mubr.bf16.mxu0 %v1712_v4  ;;  %v1708_v5 = vld [vmem:[#allocation5 + $0x20] sm:$0xff]   ;;  %v1709_v6 = vld [vmem:[#allocation5 + $0x28] sm:$0xff]   ;;  %v1710_v9 = vld [vmem:[#allocation5 + $0x30] sm:$0xff]   ;;  %v447_v31 = vshrl.u32 %v446_v30, 7  ;;  %s1246_s21 = sshll.u32 %s2293_s16, 4  ;;  %s1233_s13 = scalar_lea.sflag [#allocation4], %s2248_s30  ;;  %s2315_s21 = int_to_ptr.vmem [resolvable:$true] %s1246_s21 }
  0x9f   : > { %1487 = vmatprep.subr.bf16.mxu0 %v1705_v1  ;;  %v1720_v7 = vld [vmem:[#allocation7] sm:$0xff]   ;;  %v1721_v8 = vld [vmem:[#allocation7 + $0x8] sm:$0xff]   ;;  %v1722_v10 = vld [vmem:[#allocation7 + $0x10] sm:$0xff]   ;;  %s1886_s25 = scalar_lea.vmem %s2315_s21, 2048  ;;  %s1969_s26 = smov [#allocation11]  }
  0xa0   : > { %1517 = vmatprep.subr.bf16.mxu1 %v1720_v7  ;;  %v1711_v11 = vld [vmem:[#allocation5 + $0x38] sm:$0xff]   ;;  %v1724_v13 = vld [vmem:[#allocation7 + $0x20] sm:$0xff]   ;;  %v1713_v14 = vld [vmem:[%s2252_s29 + $0x8] sm:$0xff]   ;;  %v2277_v34 = vsub.s32 0, %v447_v31  ;;  %p1887_p3 = scmp.ne.s32.totalorder %s2315_s21, %s1886_s25  ;;  %s1890_s19 = sshll.u32 %s1969_s26, 4  ;;  %s1891_s19 = int_to_ptr.vmem [resolvable:$false] %s1890_s19 }
  0xa1   : > { %1518 = vmatpush3.bf16.msra.mxu1 %v1720_v7  ;;  %v1723_v12 = vld [vmem:[#allocation7 + $0x18] sm:$0xff]   ;;  %v1714_v15 = vld [vmem:[%s2252_s29 + $0x10] sm:$0xff]   ;;  %v1725_v16 = vld [vmem:[#allocation7 + $0x28] sm:$0xff]   ;;  %s1892_s22 = scalar_lea.vmem %s1891_s19, 4096  ;;  %p1893_p12 = scmp.lt.s32.totalorder %s2315_s21, %s1891_s19 }
  0xa2   : > { %1488 = vmatpush3.bf16.msra.mxu0 %v1705_v1  ;;  %1519 = vmatprep.subr.bf16.mxu1 %v1721_v8  ;;  %v1715_v17 = vld [vmem:[%s2252_s29 + $0x18] sm:$0xff]   ;;  %v1716_v18 = vld [vmem:[%s2252_s29 + $0x20] sm:$0xff]   ;;  %v1717_v19 = vld [vmem:[%s2252_s29 + $0x28] sm:$0xff]   ;;  %p1888_p5 = pnand %p1887_p3, %p2193_p10  ;;  %p1894_p1 = scmp.lt.s32.totalorder %s1892_s22, %s1886_s25 }
  0xa3   : > { %1489 = vmatprep.subr.bf16.mxu0 %v1706_v2  ;;  %v1718_v20 = vld [vmem:[%s2252_s29 + $0x30] sm:$0xff]   ;;  %v1719_v21 = vld [vmem:[%s2252_s29 + $0x38] sm:$0xff]   ;;  %v1728_v24 = vld [vmem:[#allocation8] sm:$0xff]   ;;  %s2313_s17 = scalar_lea.hbm %s2395_s15, %s1420_s23 }
  0xa4   : > { %v1726_v22 = vld [vmem:[#allocation7 + $0x30] sm:$0xff]   ;;  %v1727_v23 = vld [vmem:[#allocation7 + $0x38] sm:$0xff]   ;;  %v1729_v25 = vld [vmem:[#allocation8 + $0x8] sm:$0xff]   ;;  %p1889_p7 = pneg %p1888_p5  ;;  %p1895_p2 = por %p1894_p1, %p1893_p12 }
  0xa5   : > { %1520 = vmatpush3.bf16.msra.mxu1 %v1721_v8  ;;  %v1730_v26 = vld [vmem:[#allocation8 + $0x10] sm:$0xff]   ;;  %v1731_v27 = vld [vmem:[#allocation8 + $0x18] sm:$0xff]   ;;  %v1732_v28 = vld [vmem:[#allocation8 + $0x20] sm:$0xff]  }
  0xa6   : > { %1490 = vmatpush3.bf16.msra.mxu0 %v1706_v2  ;;  %1521 = vmatprep.subr.bf16.mxu1 %v1722_v10  ;;  %v1733_v29 = vld [vmem:[#allocation8 + $0x28] sm:$0xff]   ;;  %v444_v32 = vld [vmem:[%s2364_s2] sm:$0x1]  ;;  %p1896_p13 = pnand %p1895_p2, %p1889_p7 }
  0xa7   : > { %1491 = vmatprep.subr.bf16.mxu0 %v1707_v3  ;;  %v445_v33 = vunpack.c.l.bf16 %v444_v32  ;;  %v1736_v30 = vld [vmem:[#allocation10] sm:$0xff]   ;;  %v1737_v31 = vld [vmem:[#allocation10 + $0x8] sm:$0xff]   ;;  %v1738_v32 = vld [vmem:[#allocation10 + $0x10] sm:$0xff]  }
  0xa9   : > { %1522 = vmatpush3.bf16.msra.mxu1 %v1722_v10  ;;  %v449_v35 = vrot.slane %v445_v33, %v2277_v34  ;;  %v1739_v33 = vld [vmem:[#allocation10 + $0x18] sm:$0xff]  }
  0xaa   : > { %1492 = vmatpush3.bf16.msra.mxu0 %v1707_v3  ;;  %1523 = vmatprep.subr.bf16.mxu1 %v1723_v12 }
  0xab   : > { %1493 = vmatprep.subr.bf16.mxu0 %v1708_v5 }
  0xad   : > { %1524 = vmatpush3.bf16.msra.mxu1 %v1723_v12 }
  0xae   : > { %1494 = vmatpush3.bf16.msra.mxu0 %v1708_v5  ;;  %1525 = vmatprep.subr.bf16.mxu1 %v1724_v13 }
  0xaf   : > { %1495 = vmatprep.subr.bf16.mxu0 %v1709_v6 }
  0xb1   : > { %1526 = vmatpush3.bf16.msra.mxu1 %v1724_v13 }
  0xb2   : > { %1496 = vmatpush3.bf16.msra.mxu0 %v1709_v6  ;;  %1527 = vmatprep.subr.bf16.mxu1 %v1725_v16 }
  0xb3   : > { %1497 = vmatprep.subr.bf16.mxu0 %v1710_v9 }
  0xb5   : > { %1528 = vmatpush3.bf16.msra.mxu1 %v1725_v16 }
  0xb6   : > { %1498 = vmatpush3.bf16.msra.mxu0 %v1710_v9  ;;  %1529 = vmatprep.subr.bf16.mxu1 %v1726_v22 }
  0xb7   : > { %1499 = vmatprep.subr.bf16.mxu0 %v1711_v11 }
  0xb9   : > { %1530 = vmatpush3.bf16.msra.mxu1 %v1726_v22 }
  0xba   : > { %1500 = vmatpush3.bf16.msra.mxu0 %v1711_v11  ;;  %1531 = vmatprep.subr.bf16.mxu1 %v1727_v23 }
  0xbb   : > { %1549 = vmatprep.subr.bf16.mxu0 %v1728_v24 }
  0xbd   : > { %1502 = vmatmul.mubr.bf16.vlgmr.msra.gmra.mrb[0].mxu0 %v1713_v14  ;;  %1532 = vmatpush3.bf16.msra.mxu1 %v1727_v23 }
  0xbe   : > { %1505 = vmatprep.mubr.bf16.mxu0 %v1714_v15  ;;  %1550 = vmatpush3.bf16.msra.mxu0 %v1728_v24 }
  0xbf   : > { %1551 = vmatprep.subr.bf16.mxu0 %v1729_v25  ;;  %1581 = vmatprep.subr.bf16.mxu1 %v1736_v30 }
  0xc2   : > { %1552 = vmatpush3.bf16.msra.mxu0 %v1729_v25 }
  0xc3   : > { %1553 = vmatprep.subr.bf16.mxu0 %v1730_v26 }
  0xc5   : > { %1506 = vmatmul.mubr.bf16.gmra.mrb[4].mxu0 %v1715_v17 }
  0xc6   : > { %1509 = vmatprep.mubr.bf16.mxu0 %v1716_v18  ;;  %1554 = vmatpush3.bf16.msra.mxu0 %v1730_v26 }
  0xc7   : > { %1555 = vmatprep.subr.bf16.mxu0 %v1731_v27 }
  0xca   : > { %1556 = vmatpush3.bf16.msra.mxu0 %v1731_v27 }
  0xcb   : > { %1557 = vmatprep.subr.bf16.mxu0 %v1732_v28 }
  0xcd   : > { %1510 = vmatmul.mubr.bf16.gmra.mrb[8].mxu0 %v1717_v19 }
  0xce   : > { %1513 = vmatprep.mubr.bf16.mxu0 %v1718_v20  ;;  %1558 = vmatpush3.bf16.msra.mxu0 %v1732_v28  ;;  %v1734_v28 = vld [vmem:[#allocation8 + $0x30] sm:$0xff]  }
  0xcf   : > { %1559 = vmatprep.subr.bf16.mxu0 %v1733_v29 }
  0xd2   : > { %1560 = vmatpush3.bf16.msra.mxu0 %v1733_v29  ;;  %v1735_v29 = vld [vmem:[#allocation8 + $0x38] sm:$0xff]  }
  0xd3   : > { %1561 = vmatprep.subr.bf16.mxu0 %v1734_v28 }
  0xd5   : > { %1514 = vmatmul.mubr.bf16.gmra.mrb[12].mxu0 %v1719_v21 }
  0xd6   : > { %1562 = vmatpush3.bf16.msra.mxu0 %v1734_v28 }
  0xd7   : > { %1563 = vmatprep.subr.bf16.mxu0 %v1735_v29 }
  0xda   : > { %1564 = vmatpush3.bf16.msra.mxu0 %v1735_v29 }
 0x190   : > { %v1503_v36 = vpop.f32.mrb[0].mxu0 }
 0x191   : > { %v589_v37 = vadd.f32 %v1503_v36, %v449_v35  ;;  %v580_v38 = vpop.f32.mrb[1].mxu0  ;;  %v1741_v36 = vld [vmem:[#allocation10 + $0x28] sm:$0xff]  }
 0x192   : > { %v581_v39 = vadd.f32 %v580_v38, %v449_v35  ;;  %v1504_v40 = vpop.f32.mrb[2].mxu0 }
 0x193   : > { %v592_v41 = vadd.f32 %v1504_v40, %v449_v35  ;;  %v583_v42 = vpop.f32.mrb[3].mxu0  ;;  %v645_v44 = vmax.f32 %v589_v37, 0.0  ;;  %v683_v37 = vld [vmem:[%s2366_s4] sm:$0x1] }
 0x194   : > { %v584_v43 = vadd.f32 %v583_v42, %v449_v35  ;;  %v643_v46 = vmax.f32 %v581_v39, 0.0  ;;  %v684_v38 = vunpack.c.l.bf16 %v683_v37 }
 0x195   : > { %v646_v45 = vmax.f32 %v592_v41, 0.0 }
 0x196   : > { %v644_v47 = vmax.f32 %v584_v43, 0.0  ;;  %v688_v39 = vrot.slane %v684_v38, %v2277_v34 }
 0x197   : > { %v660_v48 = vpack.c.bf16 %v646_v45, %v645_v44 }
 0x198   : > { %v1507_v49 = vpop.f32.mrb[4].mxu0  ;;  %v659_v50 = vpack.c.bf16 %v644_v47, %v643_v46 }
 0x199   : > { %v605_v51 = vadd.f32 %v1507_v49, %v449_v35  ;;  %v596_v52 = vpop.f32.mrb[5].mxu0 }
 0x19a   : > { %v597_v53 = vadd.f32 %v596_v52, %v449_v35  ;;  %v1508_v54 = vpop.f32.mrb[6].mxu0  ;;  %1533 = vmatprep.mubr.bf16.mxu1 %v659_v50 }
 0x19b   : > { %v608_v55 = vadd.f32 %v1508_v54, %v449_v35  ;;  %v599_v56 = vpop.f32.mrb[7].mxu0  ;;  %1534 = vmatmul.mubr.bf16.vlgmr.msra.gmra.mrb[0].mxu1 %v660_v48  ;;  %v649_v58 = vmax.f32 %v605_v51, 0.0 }
 0x19c   : > { %v600_v57 = vadd.f32 %v599_v56, %v449_v35  ;;  %v647_v60 = vmax.f32 %v597_v53, 0.0  ;;  %1582 = vmatpush3.bf16.msra.mxu1 %v1736_v30 }
 0x19d   : > { %v650_v59 = vmax.f32 %v608_v55, 0.0  ;;  %1583 = vmatprep.subr.bf16.mxu1 %v1737_v31 }
 0x19e   : > { %v648_v61 = vmax.f32 %v600_v57, 0.0 }
 0x19f   : > { %v662_v62 = vpack.c.bf16 %v650_v59, %v649_v58 }
 0x1a0   : > { %v661_v63 = vpack.c.bf16 %v648_v61, %v647_v60  ;;  %v1511_v0 = vpop.f32.mrb[8].mxu0  ;;  %1584 = vmatpush3.bf16.msra.mxu1 %v1737_v31 }
 0x1a1   : > { %v621_v1 = vadd.f32 %v1511_v0, %v449_v35  ;;  %v612_v2 = vpop.f32.mrb[9].mxu0  ;;  %1585 = vmatprep.subr.bf16.mxu1 %v1738_v32 }
 0x1a2   : > { %v613_v3 = vadd.f32 %v612_v2, %v449_v35  ;;  %v1512_v4 = vpop.f32.mrb[10].mxu0  ;;  %1537 = vmatprep.mubr.bf16.mxu1 %v661_v63 }
 0x1a3   : > { %v624_v5 = vadd.f32 %v1512_v4, %v449_v35  ;;  %v615_v6 = vpop.f32.mrb[11].mxu0  ;;  %1538 = vmatmul.mubr.bf16.gmra.mrb[4].mxu1 %v662_v62  ;;  %v653_v8 = vmax.f32 %v621_v1, 0.0 }
 0x1a4   : > { %v616_v7 = vadd.f32 %v615_v6, %v449_v35  ;;  %v651_v10 = vmax.f32 %v613_v3, 0.0  ;;  %1586 = vmatpush3.bf16.msra.mxu1 %v1738_v32  ;;  %v1742_v32 = vld [vmem:[#allocation10 + $0x30] sm:$0xff]  }
 0x1a5   : > { %v654_v9 = vmax.f32 %v624_v5, 0.0  ;;  %1587 = vmatprep.subr.bf16.mxu1 %v1739_v33 }
 0x1a6   : > { %v652_v11 = vmax.f32 %v616_v7, 0.0 }
 0x1a7   : > { %v664_v12 = vpack.c.bf16 %v654_v9, %v653_v8 }
 0x1a8   : > { %v663_v13 = vpack.c.bf16 %v652_v11, %v651_v10  ;;  %v1515_v14 = vpop.f32.mrb[12].mxu0  ;;  %1588 = vmatpush3.bf16.msra.mxu1 %v1739_v33  ;;  %v1743_v33 = vld [vmem:[#allocation10 + $0x38] sm:$0xff]  }
 0x1a9   : > { %v637_v15 = vadd.f32 %v1515_v14, %v449_v35  ;;  %v628_v16 = vpop.f32.mrb[13].mxu0 }
 0x1aa   : > { %v629_v17 = vadd.f32 %v628_v16, %v449_v35  ;;  %v1516_v18 = vpop.f32.mrb[14].mxu0  ;;  %1541 = vmatprep.mubr.bf16.mxu1 %v663_v13 }
 0x1ab   : > { %v640_v19 = vadd.f32 %v1516_v18, %v449_v35  ;;  %v631_v20 = vpop.f32.mrb[15].mxu0  ;;  %1542 = vmatmul.mubr.bf16.gmra.mrb[8].mxu1 %v664_v12  ;;  %v657_v22 = vmax.f32 %v637_v15, 0.0 }
 0x1ac   : > { %v632_v21 = vadd.f32 %v631_v20, %v449_v35  ;;  %v655_v24 = vmax.f32 %v629_v17, 0.0  ;;  %v1740_v35 = vld [vmem:[#allocation10 + $0x20] sm:$0xff]  }
 0x1ad   : > { %v658_v23 = vmax.f32 %v640_v19, 0.0  ;;  %1589 = vmatprep.subr.bf16.mxu1 %v1740_v35 }
 0x1ae   : > { %v656_v25 = vmax.f32 %v632_v21, 0.0  ;;  %1590 = vmatpush3.bf16.msra.mxu1 %v1740_v35  ;;  %v874_v35 = vld [vmem:[%s2368_s6] sm:$0x1] }
 0x1af   : > { %v666_v26 = vpack.c.bf16 %v658_v23, %v657_v22  ;;  %1591 = vmatprep.subr.bf16.mxu1 %v1741_v36 }
 0x1b0   : > { %v665_v27 = vpack.c.bf16 %v656_v25, %v655_v24 }
 0x1b2   : > { %1545 = vmatprep.mubr.bf16.mxu1 %v665_v27  ;;  %1592 = vmatpush3.bf16.msra.mxu1 %v1741_v36  ;;  %v875_v36 = vunpack.c.l.bf16 %v874_v35 }
 0x1b3   : > { %1546 = vmatmul.mubr.bf16.gmra.mrb[12].mxu1 %v666_v26  ;;  %1593 = vmatprep.subr.bf16.mxu1 %v1742_v32 }
 0x1b4   : > { %v879_v37 = vrot.slane %v875_v36, %v2277_v34 }
 0x1b6   : > { %1594 = vmatpush3.bf16.msra.mxu1 %v1742_v32 }
 0x1b7   : > { %1595 = vmatprep.subr.bf16.mxu1 %v1743_v33 }
 0x1ba   : > { %1596 = vmatpush3.bf16.msra.mxu1 %v1743_v33 }
 0x26e   : > { %v1535_v40 = vpop.f32.mrb[0].mxu1 }
 0x26f   : > { %v780_v41 = vadd.f32 %v1535_v40, %v688_v39  ;;  %v771_v42 = vpop.f32.mrb[1].mxu1 }
 0x270   : > { %v772_v43 = vadd.f32 %v771_v42, %v688_v39  ;;  %v1536_v44 = vpop.f32.mrb[2].mxu1 }
 0x271   : > { %v783_v45 = vadd.f32 %v1536_v44, %v688_v39  ;;  %v774_v46 = vpop.f32.mrb[3].mxu1  ;;  %v836_v48 = vmax.f32 %v780_v41, 0.0 }
 0x272   : > { %v775_v47 = vadd.f32 %v774_v46, %v688_v39  ;;  %v834_v50 = vmax.f32 %v772_v43, 0.0 }
 0x273   : > { %v837_v49 = vmax.f32 %v783_v45, 0.0 }
 0x274   : > { %v835_v51 = vmax.f32 %v775_v47, 0.0 }
 0x275   : > { %v851_v52 = vpack.c.bf16 %v837_v49, %v836_v48 }
 0x276   : > { %v850_v53 = vpack.c.bf16 %v835_v51, %v834_v50  ;;  %v1539_v54 = vpop.f32.mrb[4].mxu1 }
 0x277   : > { %v796_v55 = vadd.f32 %v1539_v54, %v688_v39  ;;  %v787_v56 = vpop.f32.mrb[5].mxu1 }
 0x278   : > { %v788_v57 = vadd.f32 %v787_v56, %v688_v39  ;;  %v1540_v58 = vpop.f32.mrb[6].mxu1  ;;  %1565 = vmatprep.mubr.bf16.mxu0 %v850_v53 }
 0x279   : > { %v799_v59 = vadd.f32 %v1540_v58, %v688_v39  ;;  %v790_v60 = vpop.f32.mrb[7].mxu1  ;;  %1566 = vmatmul.mubr.bf16.vlgmr.msra.gmra.mrb[16].mxu0 %v851_v52  ;;  %v840_v62 = vmax.f32 %v796_v55, 0.0 }
 0x27a   : > { %v791_v61 = vadd.f32 %v790_v60, %v688_v39  ;;  %v838_v0 = vmax.f32 %v788_v57, 0.0 }
 0x27b   : > { %v841_v63 = vmax.f32 %v799_v59, 0.0 }
 0x27c   : > { %v839_v1 = vmax.f32 %v791_v61, 0.0 }
 0x27d   : > { %v853_v2 = vpack.c.bf16 %v841_v63, %v840_v62 }
 0x27e   : > { %v852_v3 = vpack.c.bf16 %v839_v1, %v838_v0  ;;  %v1543_v4 = vpop.f32.mrb[8].mxu1 }
 0x27f   : > { %v812_v5 = vadd.f32 %v1543_v4, %v688_v39  ;;  %v803_v6 = vpop.f32.mrb[9].mxu1 }
 0x280   : > { %v804_v7 = vadd.f32 %v803_v6, %v688_v39  ;;  %v1544_v8 = vpop.f32.mrb[10].mxu1  ;;  %1569 = vmatprep.mubr.bf16.mxu0 %v852_v3 }
 0x281   : > { %v815_v9 = vadd.f32 %v1544_v8, %v688_v39  ;;  %v806_v10 = vpop.f32.mrb[11].mxu1  ;;  %1570 = vmatmul.mubr.bf16.gmra.mrb[20].mxu0 %v853_v2  ;;  %v844_v12 = vmax.f32 %v812_v5, 0.0 }
 0x282   : > { %v807_v11 = vadd.f32 %v806_v10, %v688_v39  ;;  %v842_v14 = vmax.f32 %v804_v7, 0.0 }
 0x283   : > { %v845_v13 = vmax.f32 %v815_v9, 0.0 }
 0x284   : > { %v843_v15 = vmax.f32 %v807_v11, 0.0 }
 0x285   : > { %v855_v16 = vpack.c.bf16 %v845_v13, %v844_v12 }
 0x286   : > { %v854_v17 = vpack.c.bf16 %v843_v15, %v842_v14  ;;  %v1547_v18 = vpop.f32.mrb[12].mxu1 }
 0x287   : > { %v828_v19 = vadd.f32 %v1547_v18, %v688_v39  ;;  %v819_v20 = vpop.f32.mrb[13].mxu1 }
 0x288   : > { %v820_v21 = vadd.f32 %v819_v20, %v688_v39  ;;  %v1548_v22 = vpop.f32.mrb[14].mxu1  ;;  %1573 = vmatprep.mubr.bf16.mxu0 %v854_v17 }
 0x289   : > { %v831_v23 = vadd.f32 %v1548_v22, %v688_v39  ;;  %v822_v24 = vpop.f32.mrb[15].mxu1  ;;  %1574 = vmatmul.mubr.bf16.gmra.mrb[24].mxu0 %v855_v16  ;;  %v848_v26 = vmax.f32 %v828_v19, 0.0 }
 0x28a   : > { %v823_v25 = vadd.f32 %v822_v24, %v688_v39  ;;  %v846_v28 = vmax.f32 %v820_v21, 0.0 }
 0x28b   : > { %v849_v27 = vmax.f32 %v831_v23, 0.0 }
 0x28c   : > { %v847_v29 = vmax.f32 %v823_v25, 0.0 }
 0x28d   : > { %v857_v30 = vpack.c.bf16 %v849_v27, %v848_v26 }
 0x28e   : > { %v856_v31 = vpack.c.bf16 %v847_v29, %v846_v28 }
 0x290   : > { %1577 = vmatprep.mubr.bf16.mxu0 %v856_v31 }
 0x291   : > { %1578 = vmatmul.mubr.bf16.gmra.mrb[28].mxu0 %v857_v30  ;;  %v1065_v30 = vld [vmem:[%s2370_s8] sm:$0x1] }
 0x292   : > { %v1066_v31 = vunpack.c.l.bf16 %v1065_v30 }
 0x294   : > { %v1070_v32 = vrot.slane %v1066_v31, %v2277_v34 }
 0x34c   : > { %v1567_v38 = vpop.f32.mrb[16].mxu0 }
 0x34d   : > { %v971_v39 = vadd.f32 %v1567_v38, %v879_v37  ;;  %v962_v40 = vpop.f32.mrb[17].mxu0 }
 0x34e   : > { %v963_v41 = vadd.f32 %v962_v40, %v879_v37  ;;  %v1568_v42 = vpop.f32.mrb[18].mxu0 }
 0x34f   : > { %v974_v43 = vadd.f32 %v1568_v42, %v879_v37  ;;  %v965_v44 = vpop.f32.mrb[19].mxu0  ;;  %v1027_v46 = vmax.f32 %v971_v39, 0.0 }
 0x350   : > { %v966_v45 = vadd.f32 %v965_v44, %v879_v37  ;;  %v1025_v48 = vmax.f32 %v963_v41, 0.0 }
 0x351   : > { %v1028_v47 = vmax.f32 %v974_v43, 0.0 }
 0x352   : > { %v1026_v49 = vmax.f32 %v966_v45, 0.0 }
 0x353   : > { %v1042_v50 = vpack.c.bf16 %v1028_v47, %v1027_v46 }
 0x354   : > { %v1041_v51 = vpack.c.bf16 %v1026_v49, %v1025_v48  ;;  %v1571_v52 = vpop.f32.mrb[20].mxu0 }
 0x355   : > { %v987_v53 = vadd.f32 %v1571_v52, %v879_v37  ;;  %v978_v54 = vpop.f32.mrb[21].mxu0 }
 0x356   : > { %v979_v55 = vadd.f32 %v978_v54, %v879_v37  ;;  %v1572_v56 = vpop.f32.mrb[22].mxu0  ;;  %1597 = vmatprep.mubr.bf16.mxu1 %v1041_v51 }
 0x357   : > { %v990_v57 = vadd.f32 %v1572_v56, %v879_v37  ;;  %v981_v58 = vpop.f32.mrb[23].mxu0  ;;  %1598 = vmatmul.mubr.bf16.vlgmr.msra.gmra.mrb[16].mxu1 %v1042_v50  ;;  %v1031_v60 = vmax.f32 %v987_v53, 0.0 }
 0x358   : > { %v982_v59 = vadd.f32 %v981_v58, %v879_v37  ;;  %v1029_v62 = vmax.f32 %v979_v55, 0.0 }
 0x359   : > { %v1032_v61 = vmax.f32 %v990_v57, 0.0 }
 0x35a   : > { %v1030_v63 = vmax.f32 %v982_v59, 0.0 }
 0x35b   : > { %v1044_v0 = vpack.c.bf16 %v1032_v61, %v1031_v60 }
 0x35c   : > { %v1043_v1 = vpack.c.bf16 %v1030_v63, %v1029_v62  ;;  %v1575_v2 = vpop.f32.mrb[24].mxu0 }
 0x35d   : > { %v1003_v3 = vadd.f32 %v1575_v2, %v879_v37  ;;  %v994_v4 = vpop.f32.mrb[25].mxu0 }
 0x35e   : > { %v995_v5 = vadd.f32 %v994_v4, %v879_v37  ;;  %v1576_v6 = vpop.f32.mrb[26].mxu0  ;;  %1601 = vmatprep.mubr.bf16.mxu1 %v1043_v1 }
 0x35f   : > { %v1006_v7 = vadd.f32 %v1576_v6, %v879_v37  ;;  %v997_v8 = vpop.f32.mrb[27].mxu0  ;;  %1602 = vmatmul.mubr.bf16.gmra.mrb[20].mxu1 %v1044_v0  ;;  %v1035_v10 = vmax.f32 %v1003_v3, 0.0 }
 0x360   : > { %v998_v9 = vadd.f32 %v997_v8, %v879_v37  ;;  %v1033_v12 = vmax.f32 %v995_v5, 0.0 }
 0x361   : > { %v1036_v11 = vmax.f32 %v1006_v7, 0.0 }
 0x362   : > { %v1034_v13 = vmax.f32 %v998_v9, 0.0 }
 0x363   : > { %v1046_v14 = vpack.c.bf16 %v1036_v11, %v1035_v10 }
 0x364   : > { %v1045_v15 = vpack.c.bf16 %v1034_v13, %v1033_v12  ;;  %v1579_v16 = vpop.f32.mrb[28].mxu0 }
 0x365   : > { %v1019_v17 = vadd.f32 %v1579_v16, %v879_v37  ;;  %v1010_v18 = vpop.f32.mrb[29].mxu0 }
 0x366   : > { %v1011_v19 = vadd.f32 %v1010_v18, %v879_v37  ;;  %v1580_v20 = vpop.f32.mrb[30].mxu0  ;;  %1605 = vmatprep.mubr.bf16.mxu1 %v1045_v15 }
 0x367   : > { %v1022_v21 = vadd.f32 %v1580_v20, %v879_v37  ;;  %v1013_v22 = vpop.f32.mrb[31].mxu0  ;;  %1606 = vmatmul.mubr.bf16.gmra.mrb[24].mxu1 %v1046_v14  ;;  %v1039_v24 = vmax.f32 %v1019_v17, 0.0 }
 0x368   : > { %v1014_v23 = vadd.f32 %v1013_v22, %v879_v37  ;;  %v1037_v26 = vmax.f32 %v1011_v19, 0.0 }
 0x369   : > { %v1040_v25 = vmax.f32 %v1022_v21, 0.0 }
 0x36a   : > { %v1038_v27 = vmax.f32 %v1014_v23, 0.0 }
 0x36b   : > { %v1048_v28 = vpack.c.bf16 %v1040_v25, %v1039_v24 }
 0x36c   : > { %v1047_v29 = vpack.c.bf16 %v1038_v27, %v1037_v26 }
 0x36e   : > { %1609 = vmatprep.mubr.bf16.mxu1 %v1047_v29 }
 0x36f   : > { %1610 = vmatmul.mubr.bf16.gmra.mrb[28].mxu1 %v1048_v28 }
 0x42a   : > { %v1599_v33 = vpop.f32.mrb[16].mxu1 }
 0x42b   : > { %v1162_v35 = vadd.f32 %v1599_v33, %v1070_v32  ;;  %v1153_v36 = vpop.f32.mrb[17].mxu1 }
 0x42c   : > { %v1154_v37 = vadd.f32 %v1153_v36, %v1070_v32  ;;  %v1600_v38 = vpop.f32.mrb[18].mxu1 }
 0x42d   : > { %1218 = vst [vmem:[%s2293_s16 + $0x10] sm:$0xff] %v1162_v35  ;;  %v1165_v39 = vadd.f32 %v1600_v38, %v1070_v32  ;;  %v1156_v40 = vpop.f32.mrb[19].mxu1 }
 0x42e   : > { %1216 = vst [vmem:[%s2293_s16] sm:$0xff] %v1154_v37  ;;  %v1157_v34 = vadd.f32 %v1156_v40, %v1070_v32 }
 0x42f   : > { %1219 = vst [vmem:[%s2293_s16 + $0x18] sm:$0xff] %v1165_v39 }
 0x430   : > { %1217 = vst [vmem:[%s2293_s16 + $0x8] sm:$0xff] %v1157_v34 }
 0x432   : > { %v1603_v41 = vpop.f32.mrb[20].mxu1 }
 0x433   : > { %v1178_v42 = vadd.f32 %v1603_v41, %v1070_v32  ;;  %v1169_v43 = vpop.f32.mrb[21].mxu1 }
 0x434   : > { %v1170_v44 = vadd.f32 %v1169_v43, %v1070_v32  ;;  %v1604_v45 = vpop.f32.mrb[22].mxu1 }
 0x435   : > { %1222 = vst [vmem:[%s2293_s16 + $0x30] sm:$0xff] %v1178_v42  ;;  %v1181_v46 = vadd.f32 %v1604_v45, %v1070_v32  ;;  %v1172_v47 = vpop.f32.mrb[23].mxu1 }
 0x436   : > { %1220 = vst [vmem:[%s2293_s16 + $0x20] sm:$0xff] %v1170_v44  ;;  %v1173_v48 = vadd.f32 %v1172_v47, %v1070_v32 }
 0x437   : > { %1223 = vst [vmem:[%s2293_s16 + $0x38] sm:$0xff] %v1181_v46 }
 0x438   : > { %1221 = vst [vmem:[%s2293_s16 + $0x28] sm:$0xff] %v1173_v48 }
 0x43a   : > { %v1607_v49 = vpop.f32.mrb[24].mxu1 }
 0x43b   : > { %v1194_v50 = vadd.f32 %v1607_v49, %v1070_v32  ;;  %v1185_v51 = vpop.f32.mrb[25].mxu1 }
 0x43c   : > { %v1186_v52 = vadd.f32 %v1185_v51, %v1070_v32  ;;  %v1608_v53 = vpop.f32.mrb[26].mxu1 }
 0x43d   : > { %1226 = vst [vmem:[%s2293_s16 + $0x50] sm:$0xff] %v1194_v50  ;;  %v1197_v54 = vadd.f32 %v1608_v53, %v1070_v32  ;;  %v1188_v55 = vpop.f32.mrb[27].mxu1 }
 0x43e   : > { %1224 = vst [vmem:[%s2293_s16 + $0x40] sm:$0xff] %v1186_v52  ;;  %v1189_v56 = vadd.f32 %v1188_v55, %v1070_v32 }
 0x43f   : > { %1227 = vst [vmem:[%s2293_s16 + $0x58] sm:$0xff] %v1197_v54 }
 0x440   : > { %1225 = vst [vmem:[%s2293_s16 + $0x48] sm:$0xff] %v1189_v56 }
 0x442   : > { %v1611_v57 = vpop.f32.mrb[28].mxu1 }
 0x443   : > { %v1210_v58 = vadd.f32 %v1611_v57, %v1070_v32  ;;  %v1201_v59 = vpop.f32.mrb[29].mxu1 }
 0x444   : > { %v1202_v60 = vadd.f32 %v1201_v59, %v1070_v32  ;;  %v1612_v61 = vpop.f32.mrb[30].mxu1 }
 0x445   : > { %1230 = vst [vmem:[%s2293_s16 + $0x70] sm:$0xff] %v1210_v58  ;;  %v1213_v62 = vadd.f32 %v1612_v61, %v1070_v32  ;;  %v1204_v63 = vpop.f32.mrb[31].mxu1 }
 0x446   : > { %1228 = vst [vmem:[%s2293_s16 + $0x60] sm:$0xff] %v1202_v60  ;;  %v1205_v0 = vadd.f32 %v1204_v63, %v1070_v32 }
 0x447   : > { %1231 = vst [vmem:[%s2293_s16 + $0x78] sm:$0xff] %v1213_v62 }
 0x448   : > { %1229 = vst [vmem:[%s2293_s16 + $0x68] sm:$0xff] %v1205_v0 }
 0x449   : > { %1899 = shalt.err (!%p1896_p13)
}
 0x44a   : > { %s1900_s9 = scalar_lea.hbm %s2313_s17, 2048  ;;  %s1904_s16 = scalar_lea.hbm %s2395_s15, 4096 }
 0x44b   : > { %p1901_p9 = scmp.ne.s32.totalorder %s2313_s17, %s1900_s9  ;;  %p1905_p4 = scmp.lt.u32.totalorder %s2313_s17, %s2395_s15 }
 0x44c   : > { %p1906_p8 = scmp.lt.u32.totalorder %s1904_s16, %s1900_s9  ;;  %p1908_p3 = scmp.lt.u32.totalorder %s1900_s9, %s2313_s17 }
 0x44d   : > { %p1902_p0 = pnand %p1901_p9, %p2193_p10 }
 0x44e   : > { %p1907_p6 = por %p1906_p8, %p1905_p4 }
 0x44f   : > { %p1903_p11 = pneg %p1902_p0 }
 0x450   : > { %p1909_p5 = por %p1908_p3, %p1907_p6 }
 0x452   : > { %p1910_p7 = pnand %p1909_p5, %p1903_p11 }
 0x454   : > { %1913 = shalt.err (!%p1910_p7)
}
 0x455   : > { %s1970_s29 = smov 128   ;;  %s1971_s25 = smov 8  }
 0x456   : > { %1631 = dma.vmem_to_hbm [thread:$0]  (%p2193_p10), %s2315_s21, 2048, %s2313_s17, %s1233_s13, %s1970_s29, %s1970_s29, %s1971_s25  }
 0x457 PF: > { %s2396_s26 = sld [smem:[#allocation16_spill]]  ;;  %s2397_s19 = sld [smem:[#allocation17_spill]] }
 0x458   : > { %p2399_p1 = scmp.ge.s32.totalorder %s1960_s12, 2 }
 0x45d   : > { %s1261_s22 = sand.u32 1, %s2396_s26   ;;  %p2398_p12 = scmp.ne.s32.totalorder %s2397_s19, 0 }
 0x45e   : > { %s1262_s9 = scalar_lea.sflag [#allocation4], %s1261_s22 }
 0x45f   : > { %p1651_p2 = pnand %p2399_p1, %p2398_p12 }
 0x461   : > { %1943 = dma.done.wait (!%p1651_p2), %s1262_s9, 2048  }
 0x462   : > { %1945 = vsyncadd (!%p1651_p2), %s1262_s9, 4294965248  ;;  %p24_p13 = scmp.ge.s32.totalorder %s2183_s14, 4   ;;  %s2400_s30 = smov %s1952_s10 }
 0x463   : > { %s2401_s10 = smov %s1956_s11  ;;  %s2402_s11 = smov %s2199_s28 }
 0x464   : > { %s2403_s12 = smov %s2183_s14  ;;  %26 = sbr.rel (!%p24_p13) target bundleno = 9 (0x9), region = 117 }
 0x46b   :  { %1267 = vsyncpa [#allocation3], 1 }
 0x46c   :  { %1269 = vsyncpa [#allocation3 + $0x1], 1 }
 0x46d   :  { %1270 = vsyncpa [#allocation6], 1 }
 0x46e   :  { %1271 = vsyncpa [#allocation9], 1 }
 0x46f   :  { %1272 = vsyncpa [#allocation4], 1 }
 0x470   :  { %1274 = vsyncpa [#allocation4 + $0x1], 1 }

</bundles_post_ra>
